<compile_context>
chip_gen: v7x
topology: tpu7x:2x2x1
jax: 0.10.0
libtpu: 0.0.40
codegen_flags: <defaults>
</compile_context>

<pallas_src>
import math

import jax
import jax.numpy as jnp
from jax import lax
from jax.experimental import pallas as pl
from jax.experimental.pallas import tpu as pltpu

F32_EPS = float(jnp.finfo(jnp.float32).eps)  # matches torch F.rms_norm default eps


def _pick_tile(dim, target, align):
    """Largest tile <= target that divides `dim` and is a multiple of `align`;
    falls back to the full dimension (full-dim blocks are always legal)."""
    if dim <= target:
        return dim
    t = (target // align) * align
    while t >= align:
        if dim % t == 0:
            return t
        t -= align
    return dim


# ----------------------------------------------------------------------------
# Tiled linear:  x (M, K) @ w (N, K)^T -> (M, N)      (PyTorch F.linear layout)
# Operands arrive bf16; accumulation is f32 in VMEM scratch.
# ----------------------------------------------------------------------------
def _linear_kernel(x_ref, w_ref, o_ref, acc_ref):
    @pl.when(pl.program_id(2) == 0)
    def _():
        acc_ref[...] = jnp.zeros(acc_ref.shape, acc_ref.dtype)

    acc_ref[...] += lax.dot_general(
        x_ref[...], w_ref[...],
        dimension_numbers=(((1,), (1,)), ((), ())),
        preferred_element_type=jnp.float32,
    )

    @pl.when(pl.program_id(2) == pl.num_programs(2) - 1)
    def _():
        o_ref[...] = acc_ref[...].astype(o_ref.dtype)


def pallas_linear(x, w, *, out_dtype=None, tm_target=512, tn_target=512, tk_target=1024):
    M, K = x.shape
    N, K2 = w.shape
    assert K == K2
    assert x.dtype == w.dtype, "pallas_linear expects matching operand dtypes"
    out_dtype = out_dtype or x.dtype
    tm = _pick_tile(M, tm_target, 128)   # 128-aligned LHS rows (clean MXU shapes)
    tn = _pick_tile(N, tn_target, 128)
    tk = _pick_tile(K, tk_target, 128)
    ebytes = jnp.dtype(x.dtype).itemsize
    obytes = jnp.dtype(out_dtype).itemsize
    cost = pl.CostEstimate(
        flops=2 * M * N * K,
        transcendentals=0,
        bytes_accessed=ebytes * (M * K + K * N) + obytes * M * N,
    )
    return pl.pallas_call(
        _linear_kernel,
        out_shape=jax.ShapeDtypeStruct((M, N), out_dtype),
        grid=(M // tm, N // tn, K // tk),
        in_specs=[
            pl.BlockSpec((tm, tk), lambda i, j, k: (i, k)),
            pl.BlockSpec((tn, tk), lambda i, j, k: (j, k)),
        ],
        out_specs=pl.BlockSpec((tm, tn), lambda i, j, k: (i, j)),
        scratch_shapes=[pltpu.VMEM((tm, tn), jnp.float32)],
        compiler_params=pltpu.CompilerParams(
            dimension_semantics=("parallel", "parallel", "arbitrary")),
        cost_estimate=cost,
    )(x, w)


# ----------------------------------------------------------------------------
# Fused RMS-norm (head dim) + rotary (+ attn_scale fold into q) for q,k
# AND lambda value-mix for v.  Operates directly on the (T, 3D) QKV projection;
# heads are column blocks.  Grid is (T//tt, H): heads innermost so the cos/sin
# blocks (index constant in h) are not re-fetched per head.
# ----------------------------------------------------------------------------
def _norm_rope(x, cos, sin, scale=None):
    x = x.astype(jnp.float32)
    ms = jnp.mean(x * x, axis=-1, keepdims=True)
    xn = x * lax.rsqrt(ms + F32_EPS)                      # rms_norm, no weight
    half = cos.shape[-1] // 2
    xr = pltpu.roll(xn, shift=half, axis=1)               # rotate-half: [x2 | x1]
    y = xn * cos + xr * sin                               # = [x1*c+x2*s | x2*c-x1*s]
    if scale is not None:
        y = y * scale
    return y


def _make_qk_norm_rope_vmix_kernel(scale, has_ve):
    if has_ve:
        def kernel(lam_ref, q_ref, k_ref, v_ref, ve_ref, cos_ref, sin_ref,
                   qo_ref, ko_ref, vo_ref):
            cos = cos_ref[...]
            sin = sin_ref[...]
            qo_ref[...] = _norm_rope(q_ref[...], cos, sin, scale).astype(qo_ref.dtype)
            ko_ref[...] = _norm_rope(k_ref[...], cos, sin).astype(ko_ref.dtype)
            v = (lam_ref[0] * v_ref[...].astype(jnp.float32)
                 + lam_ref[1] * ve_ref[...].astype(jnp.float32))
            vo_ref[...] = v.astype(vo_ref.dtype)
    else:
        def kernel(lam_ref, q_ref, k_ref, v_ref, cos_ref, sin_ref,
                   qo_ref, ko_ref, vo_ref):
            cos = cos_ref[...]
            sin = sin_ref[...]
            qo_ref[...] = _norm_rope(q_ref[...], cos, sin, scale).astype(qo_ref.dtype)
            ko_ref[...] = _norm_rope(k_ref[...], cos, sin).astype(ko_ref.dtype)
            v = lam_ref[0] * v_ref[...].astype(jnp.float32)
            vo_ref[...] = v.astype(vo_ref.dtype)
    return kernel


def pallas_qk_norm_rope_vmix(qkv, ve, cos_full, sin_signed, lambdas, num_heads,
                             *, scale=None, tt_target=1024):
    T, threeD = qkv.shape
    D = threeD // 3
    H = num_heads
    Dh = D // H
    assert Dh % 128 == 0, "head_dim must be a multiple of 128 for lane-dense blocks"
    tt = _pick_tile(T, tt_target, 8)

    out_shape = tuple(jax.ShapeDtypeStruct((T, D), jnp.bfloat16) for _ in range(3))
    out_spec = pl.BlockSpec((tt, Dh), lambda t, h: (t, h))

    in_specs = [
        pl.BlockSpec(memory_space=pltpu.MemorySpace.SMEM),        # lambdas
        pl.BlockSpec((tt, Dh), lambda t, h: (t, h)),              # q cols
        pl.BlockSpec((tt, Dh), lambda t, h: (t, H + h)),          # k cols
        pl.BlockSpec((tt, Dh), lambda t, h: (t, 2 * H + h)),      # v cols
    ]
    args = [lambdas, qkv, qkv, qkv]
    if ve is not None:
        in_specs.append(pl.BlockSpec((tt, Dh), lambda t, h: (t, h)))   # ve cols
        args.append(ve)
    in_specs += [
        pl.BlockSpec((tt, Dh), lambda t, h: (t, 0)),              # cos (reused over h)
        pl.BlockSpec((tt, Dh), lambda t, h: (t, 0)),              # sin (reused over h)
    ]
    args += [cos_full, sin_signed]

    return pl.pallas_call(
        _make_qk_norm_rope_vmix_kernel(scale, ve is not None),
        out_shape=out_shape,
        grid=(T // tt, H),
        in_specs=in_specs,
        out_specs=[out_spec, out_spec, out_spec],
        compiler_params=pltpu.CompilerParams(
            dimension_semantics=("parallel", "parallel")),
    )(*args)


# ----------------------------------------------------------------------------
# Flash-style causal attention: grid (H, T//tq, T//tkv), online softmax.
# Above-diagonal kv blocks are skipped (and their DMAs elided); the causal
# mask is only materialized on diagonal-crossing blocks.
# attn_scale is already folded into q by the norm/rope kernel.
# ----------------------------------------------------------------------------
def _make_flash_attn_kernel(tq, tkv):
    def kernel(q_ref, k_ref, v_ref, o_ref, m_sc, l_sc, acc_sc):
        qi = pl.program_id(1)
        ki = pl.program_id(2)
        q_start = qi * tq
        k_start = ki * tkv

        @pl.when(ki == 0)
        def _():
            m_sc[...] = jnp.full(m_sc.shape, -jnp.inf, dtype=m_sc.dtype)
            l_sc[...] = jnp.zeros(l_sc.shape, l_sc.dtype)
            acc_sc[...] = jnp.zeros(acc_sc.shape, acc_sc.dtype)

        not_above = k_start <= q_start + (tq - 1)     # block not entirely above diag
        crosses = k_start + (tkv - 1) > q_start       # block intersects the diagonal

        def block_update(apply_mask):
            s = lax.dot_general(q_ref[...], k_ref[...],
                                (((1,), (1,)), ((), ())),
                                preferred_element_type=jnp.float32)     # (tq, tkv)
            if apply_mask:
                row = q_start + lax.broadcasted_iota(jnp.int32, (tq, tkv), 0)
                col = k_start + lax.broadcasted_iota(jnp.int32, (tq, tkv), 1)
                s = jnp.where(col <= row, s, -jnp.inf)
            m_prev = m_sc[...]
            m_new = jnp.maximum(m_prev, jnp.max(s, axis=-1, keepdims=True))
            alpha = jnp.exp(m_prev - m_new)
            p = jnp.exp(s - m_new)
            l_sc[...] = alpha * l_sc[...] + jnp.sum(p, axis=-1, keepdims=True)
            acc_sc[...] = alpha * acc_sc[...] + jnp.dot(
                p.astype(v_ref.dtype), v_ref[...],
                preferred_element_type=jnp.float32)
            m_sc[...] = m_new

        @pl.when(jnp.logical_and(not_above, crosses))          # diagonal block
        def _():
            block_update(True)

        @pl.when(jnp.logical_and(not_above, jnp.logical_not(crosses)))  # fully below
        def _():
            block_update(False)

        @pl.when(ki == pl.num_programs(2) - 1)
        def _():
            inv_l = 1.0 / l_sc[...]                            # (tq, 1)
            o_ref[...] = (acc_sc[...] * inv_l).astype(o_ref.dtype)

    return kernel


def pallas_flash_causal_attention(q, k, v, num_heads, *, tq_target=512,
                                  tkv_target=256, out_dtype=jnp.bfloat16):
    T, D = q.shape
    H = num_heads
    Dh = D // H
    assert Dh % 128 == 0, "head_dim must be a multiple of 128 for lane-dense blocks"
    tq = _pick_tile(T, tq_target, 128)
    tkv = _pick_tile(T, tkv_target, 128)
    if tkv > tq:            # guard: a q row with no valid kv column would give NaN
        tkv = tq
    assert tkv <= tq
    nq, nk = T // tq, T // tkv

    def q_map(h, qi, ki):
        return (qi, h)

    def kv_map(h, qi, ki):
        # clamp the kv block index for above-diagonal steps so the (skipped)
        # steps re-reference the previous block and their DMAs are elided.
        last_valid = (qi * tq + (tq - 1)) // tkv
        return (jnp.minimum(ki, last_valid), h)

    ebytes = jnp.dtype(q.dtype).itemsize
    obytes = jnp.dtype(out_dtype).itemsize
    cost = pl.CostEstimate(
        flops=2 * H * T * T * Dh,                    # ~causal half of QK^T + PV
        transcendentals=H * T * T // 2,
        bytes_accessed=ebytes * T * D * (1 + 2 * nq) + obytes * T * D,
    )
    return pl.pallas_call(
        _make_flash_attn_kernel(tq, tkv),
        out_shape=jax.ShapeDtypeStruct((T, D), out_dtype),
        grid=(H, nq, nk),
        in_specs=[
            pl.BlockSpec((tq, Dh), q_map),
            pl.BlockSpec((tkv, Dh), kv_map),
            pl.BlockSpec((tkv, Dh), kv_map),
        ],
        out_specs=pl.BlockSpec((tq, Dh), q_map),
        scratch_shapes=[
            pltpu.VMEM((tq, 1), jnp.float32),     # running max
            pltpu.VMEM((tq, 1), jnp.float32),     # running denom
            pltpu.VMEM((tq, Dh), jnp.float32),    # output accumulator
        ],
        compiler_params=pltpu.CompilerParams(
            dimension_semantics=("parallel", "parallel", "arbitrary")),
        cost_estimate=cost,
    )(q, k, v)


# ----------------------------------------------------------------------------
# Module equivalent
# ----------------------------------------------------------------------------
class CausalSelfAttentionPallas:
    def __init__(self, dim, num_heads, layer_idx, num_layers, key, max_seq_len=2048):
        assert dim % num_heads == 0
        head_dim = dim // num_heads
        assert head_dim % 128 == 0, "head_dim must be a multiple of 128 (lane-dense)"
        self.dim = dim
        self.num_heads = num_heads
        self.attn_scale = 0.12

        k_qkv, k_proj = jax.random.split(key)
        std = 0.5 * dim ** (-0.5)
        bound = math.sqrt(3.0) * std
        qkv_w = jax.random.uniform(
            k_qkv, (3, dim, dim), jnp.float32, minval=-bound, maxval=bound)
        # bf16 weights: the linears are HBM-bound, so halving weight bytes ~2x's them.
        self.qkv_w_flat = qkv_w.reshape(3 * dim, dim).astype(jnp.bfloat16)
        self.lambdas = jnp.array([0.5, 0.5], jnp.float32)
        # USE_WANG_INIT branch of c_proj init; (out, in) layout like nn.Linear
        proj_std = 2.0 / (num_layers * dim ** 0.5)
        self.c_proj_w = (proj_std * jax.random.normal(
            k_proj, (dim, dim), jnp.float32)).astype(jnp.bfloat16)

        # Rotary tables (Rotary.__init__), precomputed full-width for lane-dense
        # elementwise RoPE with rotate-half:  y = x*cos_full + roll(x, Dh/2)*sin_signed
        freq = (1.0 / 1024.0) ** jnp.linspace(0.0, 1.0, head_dim // 4, dtype=jnp.float32)
        freq = jnp.concatenate([freq, jnp.zeros((head_dim // 4,), jnp.float32)])
        t = jnp.arange(max_seq_len, dtype=jnp.float32)
        theta = jnp.einsum("i,j->ij", t, freq)                 # (max_seq_len, Dh//2)
        cos, sin = jnp.cos(theta), jnp.sin(theta)
        self.cos_full = jnp.concatenate([cos, cos], axis=-1)       # (max_seq_len, Dh)
        self.sin_signed = jnp.concatenate([sin, -sin], axis=-1)    # (max_seq_len, Dh)

    def __call__(self, x, ve=None):
        B, T, D = x.shape
        assert B == 1, "Must use batch size = 1 (mirrors FlexAttention assert)"
        H = self.num_heads

        x2d = x[0].astype(jnp.bfloat16)                          # bf16 activations
        qkv = pallas_linear(x2d, self.qkv_w_flat,
                            out_dtype=jnp.bfloat16)              # (T, 3D) bf16

        ve2d = None if ve is None else ve.reshape(T, D).astype(jnp.bfloat16)

        q_n, k_n, v_m = pallas_qk_norm_rope_vmix(
            qkv, ve2d, self.cos_full[:T], self.sin_signed[:T], self.lambdas, H,
            scale=self.attn_scale)                               # bf16, scale in q

        y = pallas_flash_causal_attention(q_n, k_n, v_m, H)      # (T, D) bf16
        y = pallas_linear(y, self.c_proj_w, out_dtype=x.dtype)   # c_proj -> f32
        return y.reshape(1, T, D)


if __name__ == "__main__":
    key = jax.random.PRNGKey(0)
    dim, num_heads, T = 256, 2, 128          # head_dim = 128 (lane-dense)
    k_param, k_x, k_ve = jax.random.split(key, 3)

    attn = CausalSelfAttentionPallas(
        dim=dim, num_heads=num_heads, layer_idx=0, num_layers=12,
        key=k_param, max_seq_len=T,
    )
    x = jax.random.normal(k_x, (1, T, dim), jnp.float32)
    ve = jax.random.normal(k_ve, (1, T, dim), jnp.float32)

    y = attn(x, ve)                          # with value-embedding mix
    jax.block_until_ready(y)
    assert y.shape == (1, T, dim) and y.dtype == jnp.float32
    assert bool(jnp.all(jnp.isfinite(y)))

    y2 = attn(x, None)                       # exercise the no-ve kernel variant
    jax.block_until_ready(y2)
    assert y2.shape == (1, T, dim)
    assert bool(jnp.all(jnp.isfinite(y2)))

    print("KERNEL_OK")
</pallas_src>

<mosaic_0001>
module attributes {stable_mosaic.version = 11 : i64} {
  func.func @_linear_kernel(%arg0: i32, %arg1: i32, %arg2: i32, %arg3: memref<128x256xbf16, #tpu.memory_space<vmem>>, %arg4: memref<384x256xbf16, #tpu.memory_space<vmem>>, %arg5: memref<128x384xbf16, #tpu.memory_space<vmem>>, %arg6: memref<128x384xf32, #tpu.memory_space<vmem>>) attributes {dimension_semantics = [#tpu.dimension_semantics<parallel>, #tpu.dimension_semantics<parallel>, #tpu.dimension_semantics<arbitrary>], iteration_bounds = array<i64: 1, 2, 1>, scalar_prefetch = 0 : i64, scratch_operands = 1 : i64, tpu.core_type = #tpu.core_type<tc>, window_params = [{transform_indices = @transform_0, window_bounds = array<i64: 128, 256>}, {transform_indices = @transform_1, window_bounds = array<i64: 384, 256>}, {transform_indices = @transform_2, window_bounds = array<i64: 128, 384>}]} {
    %c0_i32 = arith.constant 0 : i32
    %0 = arith.cmpi eq, %arg2, %c0_i32 : i32
    %1 = arith.extui %0 : i1 to i32
    %c0_i32_0 = arith.constant 0 : i32
    %2 = arith.cmpi ne, %1, %c0_i32_0 : i32
    scf.if %2 {
      %cst_10 = arith.constant 0.000000e+00 : f32
      %12 = vector.broadcast %cst_10 : f32 to vector<128x384xf32>
      %c0_11 = arith.constant 0 : index
      %c0_12 = arith.constant 0 : index
      %13 = vector.load %arg6[%c0_11, %c0_12] : memref<128x384xf32, #tpu.memory_space<vmem>>, vector<128x384xf32>
      tpu.vector_store %arg6[%c0_11, %c0_12], %12 {strides = array<i32>} : memref<128x384xf32, #tpu.memory_space<vmem>>, vector<128x384xf32>,
    } else {
    }
    %c0 = arith.constant 0 : index
    %c0_1 = arith.constant 0 : index
    %3 = vector.load %arg6[%c0, %c0_1] : memref<128x384xf32, #tpu.memory_space<vmem>>, vector<128x384xf32>
    %c0_2 = arith.constant 0 : index
    %c0_3 = arith.constant 0 : index
    %4 = vector.load %arg3[%c0_2, %c0_3] : memref<128x256xbf16, #tpu.memory_space<vmem>>, vector<128x256xbf16>
    %c0_4 = arith.constant 0 : index
    %c0_5 = arith.constant 0 : index
    %5 = vector.load %arg4[%c0_4, %c0_5] : memref<384x256xbf16, #tpu.memory_space<vmem>>, vector<384x256xbf16>
    %cst = arith.constant dense<0.000000e+00> : vector<128x384xf32>
    %6 = tpu.matmul %4, %5, %cst {dimension_numbers = #tpu.dot_dimension_numbers<[1], [1], [0], [0], [0, 0, 1, 0], [], []>} : vector<128x256xbf16>, vector<384x256xbf16>, vector<128x384xf32> -> vector<128x384xf32>
    %7 = arith.addf %3, %6 : vector<128x384xf32>
    %c0_6 = arith.constant 0 : index
    %c0_7 = arith.constant 0 : index
    %8 = vector.load %arg6[%c0_6, %c0_7] : memref<128x384xf32, #tpu.memory_space<vmem>>, vector<128x384xf32>
    tpu.vector_store %arg6[%c0_6, %c0_7], %7 {strides = array<i32>} : memref<128x384xf32, #tpu.memory_space<vmem>>, vector<128x384xf32>,
    %c0_i32_8 = arith.constant 0 : i32
    %9 = arith.cmpi eq, %arg2, %c0_i32_8 : i32
    %10 = arith.extui %9 : i1 to i32
    %c0_i32_9 = arith.constant 0 : i32
    %11 = arith.cmpi ne, %10, %c0_i32_9 : i32
    scf.if %11 {
      %c0_10 = arith.constant 0 : index
      %c0_11 = arith.constant 0 : index
      %12 = vector.load %arg6[%c0_10, %c0_11] : memref<128x384xf32, #tpu.memory_space<vmem>>, vector<128x384xf32>
      %13 = arith.truncf %12 : vector<128x384xf32> to vector<128x384xbf16>
      %c0_12 = arith.constant 0 : index
      %c0_13 = arith.constant 0 : index
      %14 = vector.load %arg5[%c0_12, %c0_13] : memref<128x384xbf16, #tpu.memory_space<vmem>>, vector<128x384xbf16>
      tpu.vector_store %arg5[%c0_12, %c0_13], %13 {strides = array<i32>} : memref<128x384xbf16, #tpu.memory_space<vmem>>, vector<128x384xbf16>,
    } else {
    }
    return
  }
  func.func @transform_0(%arg0: i32, %arg1: i32, %arg2: i32) -> (i32, i32) {
    %c0_i32 = arith.constant 0 : i32
    return %arg0, %arg2 : i32, i32
  }
  func.func @transform_1(%arg0: i32, %arg1: i32, %arg2: i32) -> (i32, i32) {
    %c0_i32 = arith.constant 0 : i32
    return %arg1, %arg2 : i32, i32
  }
  func.func @transform_2(%arg0: i32, %arg1: i32, %arg2: i32) -> (i32, i32) {
    %c0_i32 = arith.constant 0 : i32
    return %arg0, %arg1 : i32, i32
  }
}

</mosaic_0001>

<bundles_post_ra>
// kernel: tpu_custom_call.1
= control target key start
LH: loop header
LB: loop body
LE: loop exit
PB: predicated region body
PF: predicated region fallthrough
CT: control target
= control target key end

     0   :  { %7 = vsyncpa [#allocation4], 0  ;;  %s2175_s0 = inlined_call_operand.hbm [shape: bf16[128,256], index: 0, kind: input, shape index: {}]   ;;  %s2176_s1 = inlined_call_operand.hbm [shape: bf16[768,256], index: 1, kind: input, shape index: {}]   ;;  %s2177_s2 = inlined_call_operand.hbm [shape: bf16[128,768], index: 2, kind: output, shape index: {}]  }
   0x1   :  { %8 = vsyncpa [#allocation7], 0 }
   0x2   :  { %10 = vsyncpa [#allocation7 + $0x1], 0 }
   0x3   :  { %11 = vsyncpa [#allocation5], 0 }
   0x4   :  { %13 = vsyncpa [#allocation5 + $0x1], 0  ;;  %s1870_s9 = smov 0   ;;  %s1872_s10 = smov 0  }
   0x5   :  { %s1874_s11 = smov 0   ;;  %s1876_s12 = smov 0  }
   0x6   :  { %s1878_s13 = smov 0   ;;  %s1880_s14 = smov 0  }
   0x7 LB: > { %s1380_s15 = sadd.s32 4294967295, %s1845_s14   ;;  %s1381_s16 = sadd.s32 4294967294, %s1845_s14   ;;  %s1845_s14 = sphi %s1880_s14, %s19_s14   ;;  %s1841_s13 = sphi %s1878_s13, %s2200_s13   ;;  %s1837_s12 = sphi %s1876_s12, %s2199_s12   ;;  %s1833_s11 = sphi %s1874_s11, %s2198_s11   ;;  %s1829_s10 = sphi %s1872_s10, %s2197_s10   ;;  %s1825_s9 = sphi %s1870_s9, %s2196_s9  }
   0x8   : > { %p88_p0 = scmp.ne.s32.totalorder %s1829_s10, %s1825_s9  ;;  %p1904_p1 = scmp.eq.s32.totalorder %s1380_s15, 0 }
   0x9   : > { %p1908_p2 = scmp.eq.s32.totalorder %s1380_s15, 1  ;;  %p120_p3 = scmp.eq.s32.totalorder %s1381_s16, 1 }
   0xa   : > { %s2182_s17 = scalar_select %p1904_p1, 1, 0 }
   0xb   : > { %s2183_s18 = scalar_select %p1908_p2, 1, 0 }
   0xc   : > { %p1914_p4 = por %p1904_p1, %p88_p0  ;;  %p1382_p5 = scmp.ge.s32.totalorder %s1845_s14, 1 }
   0xd   : > { %p1919_p6 = por %p120_p3, %p88_p0  ;;  %p127_p7 = scmp.lt.s32.totalorder %s1845_s14, 3 }
   0xe   : > { %s2184_s19 = scalar_select %p1914_p4, 1, 0 }
   0xf   : > { %s2185_s20 = scalar_select %p1919_p6, 1, 0 }
  0x10   : > { %p1924_p8 = pnand %p1382_p5, %p127_p7  ;;  %s1847_s22 = smov [#allocation3]  }
  0x11   : > { %s145_s23 = sshll.u32 %s1847_s22, 4  ;;  %s34_s25 = sadd.s32 1, %s1841_s13  ;;  %s146_s23 = int_to_ptr.vmem [resolvable:$true] %s145_s23 }
  0x12   : > { %s2186_s21 = scalar_select %p1924_p8, 1, 0 }
  0x13   : > { %p1535_p9 = pneg %p1924_p8  ;;  %s1701_s28 = scalar_lea.hbm %s2175_s0, 2048 }
  0x14   : > { %p1702_p12 = scmp.ne.s32.totalorder %s2175_s0, %s1701_s28  ;;  %p1708_p5 = scmp.lt.u32.totalorder %s1701_s28, %s2175_s0 }
  0x15   : > { %p1933_p11 = pnand %p1535_p9, %p1904_p1 }
  0x17   : > { %p1703_p13 = pneg %p1933_p11 }
  0x19   : > { %p1704_p0 = pnand %p1703_p13, %p1702_p12 }
  0x1b   : > { %p1705_p3 = pneg %p1704_p0 }
  0x1d   : > { %p1710_p7 = pnand %p1708_p5, %p1705_p3 }
  0x1f   : > { %1713 = shalt.err (!%p1710_p7)
}
  0x20   : > { %s1714_s5 = scalar_lea.vmem %s146_s23, 2048  ;;  %p1722_p4 = scmp.lt.s32.totalorder %s146_s23, %s146_s23 }
  0x21   : > { %p1715_p9 = scmp.ne.s32.totalorder %s146_s23, %s1714_s5  ;;  %p1723_p1 = scmp.lt.s32.totalorder %s1714_s5, %s1714_s5 }
  0x23   : > { %p1717_p10 = pnand %p1715_p9, %p1703_p13  ;;  %p1724_p8 = por %p1723_p1, %p1722_p4 }
  0x25   : > { %p1718_p6 = pneg %p1717_p10 }
  0x27   : > { %p1725_p2 = pnand %p1724_p8, %p1718_p6 }
  0x29   : > { %1728 = shalt.err (!%p1725_p2)
}
  0x2a   : > { %s1848_s6 = smov 128   ;;  %s1849_s7 = smov 8  }
  0x2b   : > { %1538 = dma.hbm_to_vmem [thread:$0]  (!%p1933_p11), %s2175_s0, 2048, %s146_s23, [#allocation4], %s1848_s6, %s1848_s6, %s1849_s7  }
  0x2c   : > { %p36_p1 = scmp.ge.s32.totalorder %s34_s25, 2  ;;  %s75_s16 = sadd.s32 1, %s1833_s11 }
  0x2d   : > { %p82_p2 = scmp.ne.s32.totalorder %s1833_s11, %s1829_s10  ;;  %p83_p4 = scmp.eq.s32.totalorder %s1845_s14, 0 }
  0x2e   : > { %s2202_s25 = smov (%p36_p1, %s34_s25), 0  ;;  %p2188_p8 = scmp.ne.s32.totalorder %s2183_s18, 0 }
  0x2f   : > { %p84_p6 = por %p83_p4, %p82_p2  ;;  %s70_s24 = ssub.s32 %s1841_s13, %s2202_s25 }
  0x30   : > { %p1965_p10 = por %p2188_p8, %p82_p2  ;;  %p1548_p12 = scmp.lt.s32.totalorder %s1845_s14, 2 }
  0x31   : > { %p73_p13 = scmp.eq.s32.totalorder %s70_s24, 0  ;;  %s159_s26 = sand.u32 1, %s1833_s11  }
  0x32   : > { %s1524_s27 = smul.u32 384, %s159_s26  ;;  %p1977_p11 = pnand %p1548_p12, %p84_p6 }
  0x33   : > { %s1974_s28 = scalar_select %p73_p13, %s1833_s11, %s75_s16  }
  0x34   : > { %s1523_s23 = smul.u32 6144, %s1841_s13  ;;  %s163_s29 = scalar_lea.vmem [#allocation6], %s1524_s27 }
  0x35   : > { %s173_s30 = sshll.u32 %s163_s29, 4  ;;  %s1988_s8 = scalar_lea.sflag [#allocation7], %s159_s26  ;;  %s1986_s30 = int_to_ptr.vmem [resolvable:$true] %s173_s30 }
  0x36   : > { %s1984_s5 = scalar_lea.hbm %s2176_s1, %s1523_s23  ;;  %p1731_p3 = pneg %p1977_p11 }
  0x37   : > { %s1729_s15 = scalar_lea.hbm %s1984_s5, 6144  ;;  %s1734_s27 = scalar_lea.hbm %s2176_s1, 12288 }
  0x38   : > { %p1730_p0 = scmp.ne.s32.totalorder %s1984_s5, %s1729_s15  ;;  %p1735_p9 = scmp.lt.u32.totalorder %s1984_s5, %s2176_s1 }
  0x39   : > { %p1736_p1 = scmp.lt.u32.totalorder %s1734_s27, %s1729_s15  ;;  %p1738_p4 = scmp.lt.u32.totalorder %s1729_s15, %s1984_s5 }
  0x3a   : > { %p1732_p5 = pnand %p1731_p3, %p1730_p0 }
  0x3b   : > { %p1737_p2 = por %p1736_p1, %p1735_p9 }
  0x3c   : > { %p1733_p7 = pneg %p1732_p5 }
  0x3d   : > { %p1739_p6 = por %p1738_p4, %p1737_p2 }
  0x3f   : > { %p1740_p8 = pnand %p1739_p6, %p1733_p7 }
  0x41   : > { %1743 = shalt.err (!%p1740_p8)
}
  0x42   : > { %s1744_s26 = scalar_lea.vmem %s1986_s30, 6144  ;;  %s1850_s4 = smov [#allocation6]  }
  0x43   : > { %p1745_p12 = scmp.ne.s32.totalorder %s1986_s30, %s1744_s26  ;;  %s1749_s18 = sshll.u32 %s1850_s4, 4  ;;  %s1750_s18 = int_to_ptr.vmem [resolvable:$false] %s1749_s18 }
  0x44   : > { %s1751_s16 = scalar_lea.vmem %s1750_s18, 12288  ;;  %p1752_p5 = scmp.lt.s32.totalorder %s1986_s30, %s1750_s18 }
  0x45   : > { %p1747_p13 = pnand %p1745_p12, %p1731_p3  ;;  %p1753_p9 = scmp.lt.s32.totalorder %s1751_s16, %s1744_s26 }
  0x47   : > { %p1748_p0 = pneg %p1747_p13  ;;  %p1754_p1 = por %p1753_p9, %p1752_p5 }
  0x49   : > { %p1755_p2 = pnand %p1754_p1, %p1748_p0 }
  0x4b   : > { %1758 = shalt.err (!%p1755_p2)
}
  0x4c   : > { %1542 = dma.hbm_to_vmem [thread:$0]  (!%p1977_p11), %s1984_s5, 6144, %s1986_s30, %s1988_s8, %s1848_s6, %s1848_s6, %s1849_s7  }
  0x4d   : > { %p2191_p3 = scmp.ne.s32.totalorder %s2186_s21, 0 }
  0x4e   : > { %p2192_p7 = scmp.ne.s32.totalorder (!%p2191_p3), %s2182_s17, 0 }
  0x4f   : > { %185 = sbr.rel (%p2191_p3) target bundleno = 510 (0x1fe), region = 28 }
  0x56   : > { %1812 = dma.done.wait (%p2192_p7), [#allocation4], 2048  }
  0x57   : > { %1814 = vsyncadd (%p2192_p7), [#allocation4], 4294965248  ;;  %s2026_s15 = sand.u32 1, %s1829_s10   ;;  %p2193_p11 = scmp.ne.s32.totalorder %s2184_s19, 0 }
  0x58   : > { %s1525_s3 = smul.u32 384, %s2026_s15  ;;  %s192_s24 = scalar_lea.sflag [#allocation7], %s2026_s15 }
  0x5a   : > { %s2030_s27 = scalar_lea.vmem [#allocation6], %s1525_s3 }
  0x5b   : > { %1816 = dma.done.wait (%p2193_p11), %s192_s24, 6144  }
  0x5c   : > { %1818 = vsyncadd (%p2193_p11), %s192_s24, 4294961152  ;;  %v1605_v0 = vld [vmem:[%s2030_s27 + $0x4] ss:$8 sps:$4 sm:$0xff]   ;;  %v1607_v1 = vld [vmem:[%s2030_s27] ss:$8 sps:$4 sm:$0xff]   ;;  %s1526_s17 = smul.u32 192, %s2026_s15 }
  0x5d   : > { %707 = vmatprep.subr.bf16.mxu0 %v1605_v0  ;;  %v1608_v2 = vld [vmem:[%s2030_s27 + $0x14] ss:$8 sps:$4 sm:$0xff]   ;;  %v1610_v3 = vld [vmem:[%s2030_s27 + $0x10] ss:$8 sps:$4 sm:$0xff]   ;;  %v1611_v4 = vld [vmem:[%s2030_s27 + $0x24] ss:$8 sps:$4 sm:$0xff]  }
  0x5e   : > { %708 = vmatpush1.bf16.xpose.msra.mxu0 %v1607_v1  ;;  %v1629_v5 = vld [vmem:[%s2030_s27 + $0x104] ss:$8 sps:$4 sm:$0xff]   ;;  %v1631_v6 = vld [vmem:[%s2030_s27 + $0x100] ss:$8 sps:$4 sm:$0xff]   ;;  %v1635_v7 = vld [vmem:[%s2030_s27 + $0x114] ss:$8 sps:$4 sm:$0xff]  }
  0x5f   : > { %709 = vmatprep.subr.bf16.mxu0 %v1608_v2  ;;  %820 = vmatprep.subr.bf16.mxu1 %v1629_v5  ;;  %v1613_v8 = vld [vmem:[%s2030_s27 + $0x20] ss:$8 sps:$4 sm:$0xff]   ;;  %v1614_v9 = vld [vmem:[%s2030_s27 + $0x34] ss:$8 sps:$4 sm:$0xff]   ;;  %v1637_v10 = vld [vmem:[%s2030_s27 + $0x110] ss:$8 sps:$4 sm:$0xff]  }
  0x60   : > { %821 = vmatpush1.bf16.xpose.msra.mxu1 %v1631_v6  ;;  %v1641_v11 = vld [vmem:[%s2030_s27 + $0x124] ss:$8 sps:$4 sm:$0xff]   ;;  %v1616_v12 = vld [vmem:[%s2030_s27 + $0x30] ss:$8 sps:$4 sm:$0xff]   ;;  %v1643_v14 = vld [vmem:[%s2030_s27 + $0x120] ss:$8 sps:$4 sm:$0xff]  }
  0x61   : > { %822 = vmatprep.subr.bf16.mxu1 %v1635_v7  ;;  %v1617_v13 = vld [vmem:[%s2030_s27 + $0x44] ss:$8 sps:$4 sm:$0xff]   ;;  %v1647_v15 = vld [vmem:[%s2030_s27 + $0x134] ss:$8 sps:$4 sm:$0xff]   ;;  %v1619_v16 = vld [vmem:[%s2030_s27 + $0x40] ss:$8 sps:$4 sm:$0xff]  }
  0x62   : > { %v1620_v17 = vld [vmem:[%s2030_s27 + $0x54] ss:$8 sps:$4 sm:$0xff]   ;;  %v1679_v18 = vld [vmem:[#allocation3 + $0x4] ss:$8 sps:$4 sm:$0xff]   ;;  %v1649_v19 = vld [vmem:[%s2030_s27 + $0x130] ss:$8 sps:$4 sm:$0xff]  }
  0x63   : > { %v1653_v20 = vld [vmem:[%s2030_s27 + $0x144] ss:$8 sps:$4 sm:$0xff]   ;;  %852 = vmatprep.mubr.bf16.mxu1 %v1679_v18  ;;  %739 = vmatprep.mubr.bf16.mxu0 %v1679_v18  ;;  %v1622_v21 = vld [vmem:[%s2030_s27 + $0x50] ss:$8 sps:$4 sm:$0xff]   ;;  %v1655_v23 = vld [vmem:[%s2030_s27 + $0x140] ss:$8 sps:$4 sm:$0xff]  }
  0x64   : > { %v1623_v22 = vld [vmem:[%s2030_s27 + $0x64] ss:$8 sps:$4 sm:$0xff]   ;;  %v1659_v24 = vld [vmem:[%s2030_s27 + $0x154] ss:$8 sps:$4 sm:$0xff]   ;;  %v1625_v25 = vld [vmem:[%s2030_s27 + $0x60] ss:$8 sps:$4 sm:$0xff]  }
  0x65   : > { %v1626_v26 = vld [vmem:[%s2030_s27 + $0x74] ss:$8 sps:$4 sm:$0xff]   ;;  %v1661_v27 = vld [vmem:[%s2030_s27 + $0x150] ss:$8 sps:$4 sm:$0xff]   ;;  %v1665_v28 = vld [vmem:[%s2030_s27 + $0x164] ss:$8 sps:$4 sm:$0xff]  }
  0x66   : > { %710 = vmatpush1.bf16.xpose.msra.mxu0 %v1610_v3  ;;  %v1628_v29 = vld [vmem:[%s2030_s27 + $0x70] ss:$8 sps:$4 sm:$0xff]   ;;  %v1632_v30 = vld [vmem:[%s2030_s27 + $0x84] ss:$8 sps:$4 sm:$0xff]   ;;  %v1667_v31 = vld [vmem:[%s2030_s27 + $0x160] ss:$8 sps:$4 sm:$0xff]  }
  0x67   : > { %711 = vmatprep.subr.bf16.mxu0 %v1611_v4  ;;  %v1671_v32 = vld [vmem:[%s2030_s27 + $0x174] ss:$8 sps:$4 sm:$0xff]   ;;  %v1634_v33 = vld [vmem:[%s2030_s27 + $0x80] ss:$8 sps:$4 sm:$0xff]   ;;  %v1673_v35 = vld [vmem:[%s2030_s27 + $0x170] ss:$8 sps:$4 sm:$0xff]  }
  0x68   : > { %823 = vmatpush1.bf16.xpose.msra.mxu1 %v1637_v10  ;;  %v1638_v34 = vld [vmem:[%s2030_s27 + $0x94] ss:$8 sps:$4 sm:$0xff]   ;;  %v1640_v36 = vld [vmem:[%s2030_s27 + $0x90] ss:$8 sps:$4 sm:$0xff]   ;;  %v1644_v37 = vld [vmem:[%s2030_s27 + $0xa4] ss:$8 sps:$4 sm:$0xff]  }
  0x69   : > { %824 = vmatprep.subr.bf16.mxu1 %v1641_v11  ;;  %v1677_v38 = vld [vmem:[#allocation3] ss:$8 sps:$4 sm:$0xff]   ;;  %v1680_v39 = vld [vmem:[#allocation3 + $0x14] ss:$8 sps:$4 sm:$0xff]   ;;  %v1682_v42 = vld [vmem:[#allocation3 + $0x10] ss:$8 sps:$4 sm:$0xff]  }
  0x6a   : > { %v1646_v40 = vld [vmem:[%s2030_s27 + $0xa0] ss:$8 sps:$4 sm:$0xff]   ;;  %v1650_v41 = vld [vmem:[%s2030_s27 + $0xb4] ss:$8 sps:$4 sm:$0xff]   ;;  %v1683_v43 = vld [vmem:[#allocation3 + $0x24] ss:$8 sps:$4 sm:$0xff]  }
  0x6b   : > { %v1652_v44 = vld [vmem:[%s2030_s27 + $0xb0] ss:$8 sps:$4 sm:$0xff]   ;;  %v1656_v45 = vld [vmem:[%s2030_s27 + $0xc4] ss:$8 sps:$4 sm:$0xff]   ;;  %v1685_v46 = vld [vmem:[#allocation3 + $0x20] ss:$8 sps:$4 sm:$0xff]  }
  0x6c   : > { %v1686_v47 = vld [vmem:[#allocation3 + $0x34] ss:$8 sps:$4 sm:$0xff]   ;;  %v1658_v48 = vld [vmem:[%s2030_s27 + $0xc0] ss:$8 sps:$4 sm:$0xff]   ;;  %v1688_v50 = vld [vmem:[#allocation3 + $0x30] ss:$8 sps:$4 sm:$0xff]  }
  0x6d   : > { %v1662_v49 = vld [vmem:[%s2030_s27 + $0xd4] ss:$8 sps:$4 sm:$0xff]   ;;  %v1689_v51 = vld [vmem:[#allocation3 + $0x44] ss:$8 sps:$4 sm:$0xff]   ;;  %v1664_v52 = vld [vmem:[%s2030_s27 + $0xd0] ss:$8 sps:$4 sm:$0xff]  }
  0x6e   : > { %712 = vmatpush1.bf16.xpose.msra.mxu0 %v1613_v8  ;;  %v1668_v53 = vld [vmem:[%s2030_s27 + $0xe4] ss:$8 sps:$4 sm:$0xff]   ;;  %v1691_v54 = vld [vmem:[#allocation3 + $0x40] ss:$8 sps:$4 sm:$0xff]   ;;  %v1692_v55 = vld [vmem:[#allocation3 + $0x54] ss:$8 sps:$4 sm:$0xff]  }
  0x6f   : > { %713 = vmatprep.subr.bf16.mxu0 %v1614_v9  ;;  %v1670_v56 = vld [vmem:[%s2030_s27 + $0xe0] ss:$8 sps:$4 sm:$0xff]   ;;  %v1674_v57 = vld [vmem:[%s2030_s27 + $0xf4] ss:$8 sps:$4 sm:$0xff]   ;;  %v1694_v58 = vld [vmem:[#allocation3 + $0x50] ss:$8 sps:$4 sm:$0xff]  }
  0x70   : > { %825 = vmatpush1.bf16.xpose.msra.mxu1 %v1643_v14  ;;  %v1695_v59 = vld [vmem:[#allocation3 + $0x64] ss:$8 sps:$4 sm:$0xff]   ;;  %v1676_v60 = vld [vmem:[%s2030_s27 + $0xf0] ss:$8 sps:$4 sm:$0xff]   ;;  %v1697_v61 = vld [vmem:[#allocation3 + $0x60] ss:$8 sps:$4 sm:$0xff]  }
  0x71   : > { %826 = vmatprep.subr.bf16.mxu1 %v1647_v15  ;;  %v1698_v62 = vld [vmem:[#allocation3 + $0x74] ss:$8 sps:$4 sm:$0xff]   ;;  %v1700_v63 = vld [vmem:[#allocation3 + $0x70] ss:$8 sps:$4 sm:$0xff]   ;;  %s2085_s19 = scalar_lea.vmem [#allocation8], %s1526_s17  ;;  %s1522_s21 = smul.u32 192, %s1837_s12 }
  0x72   : > { %s1273_s6 = sshll.u32 %s2085_s19, 4  ;;  %s1257_s12 = scalar_lea.sflag [#allocation5], %s2026_s15  ;;  %s2124_s6 = int_to_ptr.vmem [resolvable:$true] %s1273_s6 }
  0x73   : > { %s2122_s5 = scalar_lea.hbm %s2177_s2, %s1522_s21  ;;  %s1759_s8 = scalar_lea.vmem %s2124_s6, 3072 }
  0x74   : > { %p1760_p4 = scmp.ne.s32.totalorder %s2124_s6, %s1759_s8  ;;  %s1851_s23 = smov [#allocation8]  }
  0x75   : > { %s1763_s29 = sshll.u32 %s1851_s23, 4  ;;  %s1764_s29 = int_to_ptr.vmem [resolvable:$false] %s1763_s29 }
  0x76   : > { %714 = vmatpush1.bf16.xpose.msra.mxu0 %v1616_v12  ;;  %p1761_p6 = pnand %p1760_p4, %p1965_p10  ;;  %s1765_s26 = scalar_lea.vmem %s1764_s29, 6144 }
  0x77   : > { %715 = vmatprep.subr.bf16.mxu0 %v1617_v13  ;;  %p1766_p12 = scmp.lt.s32.totalorder %s2124_s6, %s1764_s29  ;;  %p1767_p13 = scmp.lt.s32.totalorder %s1765_s26, %s1759_s8 }
  0x78   : > { %827 = vmatpush1.bf16.xpose.msra.mxu1 %v1649_v19  ;;  %p1762_p8 = pneg %p1761_p6 }
  0x79   : > { %828 = vmatprep.subr.bf16.mxu1 %v1653_v20  ;;  %p1768_p0 = por %p1767_p13, %p1766_p12 }
  0x7b   : > { %p1769_p5 = pnand %p1768_p0, %p1762_p8 }
  0x7e   : > { %716 = vmatpush1.bf16.xpose.msra.mxu0 %v1619_v16 }
  0x7f   : > { %717 = vmatprep.subr.bf16.mxu0 %v1620_v17 }
  0x80   : > { %829 = vmatpush1.bf16.xpose.msra.mxu1 %v1655_v23 }
  0x81   : > { %830 = vmatprep.subr.bf16.mxu1 %v1659_v24 }
  0x86   : > { %718 = vmatpush1.bf16.xpose.msra.mxu0 %v1622_v21 }
  0x87   : > { %719 = vmatprep.subr.bf16.mxu0 %v1623_v22 }
  0x88   : > { %831 = vmatpush1.bf16.xpose.msra.mxu1 %v1661_v27 }
  0x89   : > { %832 = vmatprep.subr.bf16.mxu1 %v1665_v28 }
  0x8e   : > { %720 = vmatpush1.bf16.xpose.msra.mxu0 %v1625_v25 }
  0x8f   : > { %721 = vmatprep.subr.bf16.mxu0 %v1626_v26 }
  0x90   : > { %833 = vmatpush1.bf16.xpose.msra.mxu1 %v1667_v31 }
  0x91   : > { %834 = vmatprep.subr.bf16.mxu1 %v1671_v32 }
  0x96   : > { %722 = vmatpush1.bf16.xpose.msra.mxu0 %v1628_v29 }
  0x97   : > { %723 = vmatprep.subr.bf16.mxu0 %v1632_v30 }
  0x98   : > { %835 = vmatpush1.bf16.xpose.msra.mxu1 %v1673_v35 }
  0x9e   : > { %724 = vmatpush1.bf16.xpose.msra.mxu0 %v1634_v33 }
  0x9f   : > { %725 = vmatprep.subr.bf16.mxu0 %v1638_v34  ;;  %853 = vmatmul.mubr.bf16.vlgmr.msra.gmra.mrb[0].mxu1 %v1677_v38 }
  0xa0   : > { %860 = vmatprep.mubr.bf16.mxu1 %v1680_v39 }
  0xa6   : > { %726 = vmatpush1.bf16.xpose.msra.mxu0 %v1640_v36 }
  0xa7   : > { %727 = vmatprep.subr.bf16.mxu0 %v1644_v37  ;;  %861 = vmatmul.mubr.bf16.gmra.mrb[4].mxu1 %v1682_v42 }
  0xa8   : > { %868 = vmatprep.mubr.bf16.mxu1 %v1683_v43 }
  0xae   : > { %728 = vmatpush1.bf16.xpose.msra.mxu0 %v1646_v40 }
  0xaf   : > { %729 = vmatprep.subr.bf16.mxu0 %v1650_v41  ;;  %869 = vmatmul.mubr.bf16.gmra.mrb[8].mxu1 %v1685_v46 }
  0xb0   : > { %876 = vmatprep.mubr.bf16.mxu1 %v1686_v47 }
  0xb6   : > { %730 = vmatpush1.bf16.xpose.msra.mxu0 %v1652_v44 }
  0xb7   : > { %731 = vmatprep.subr.bf16.mxu0 %v1656_v45  ;;  %877 = vmatmul.mubr.bf16.gmra.mrb[12].mxu1 %v1688_v50 }
  0xb8   : > { %884 = vmatprep.mubr.bf16.mxu1 %v1689_v51 }
  0xbe   : > { %732 = vmatpush1.bf16.xpose.msra.mxu0 %v1658_v48 }
  0xbf   : > { %733 = vmatprep.subr.bf16.mxu0 %v1662_v49  ;;  %885 = vmatmul.mubr.bf16.gmra.mrb[16].mxu1 %v1691_v54 }
  0xc0   : > { %892 = vmatprep.mubr.bf16.mxu1 %v1692_v55 }
  0xc6   : > { %734 = vmatpush1.bf16.xpose.msra.mxu0 %v1664_v52 }
  0xc7   : > { %735 = vmatprep.subr.bf16.mxu0 %v1668_v53  ;;  %893 = vmatmul.mubr.bf16.gmra.mrb[20].mxu1 %v1694_v58 }
  0xc8   : > { %900 = vmatprep.mubr.bf16.mxu1 %v1695_v59 }
  0xce   : > { %736 = vmatpush1.bf16.xpose.msra.mxu0 %v1670_v56 }
  0xcf   : > { %737 = vmatprep.subr.bf16.mxu0 %v1674_v57  ;;  %901 = vmatmul.mubr.bf16.gmra.mrb[24].mxu1 %v1697_v61 }
  0xd0   : > { %908 = vmatprep.mubr.bf16.mxu1 %v1698_v62 }
  0xd6   : > { %738 = vmatpush1.bf16.xpose.msra.mxu0 %v1676_v60 }
  0xd7   : > { %909 = vmatmul.mubr.bf16.gmra.mrb[28].mxu1 %v1700_v63 }
  0xdd   : > { %740 = vmatmul.mubr.bf16.vlgmr.msra.gmra.mrb[0].mxu0 %v1677_v38 }
  0xde   : > { %749 = vmatprep.mubr.bf16.mxu0 %v1680_v39 }
  0xe5   : > { %750 = vmatmul.mubr.bf16.gmra.mrb[4].mxu0 %v1682_v42 }
  0xe6   : > { %759 = vmatprep.mubr.bf16.mxu0 %v1683_v43 }
  0xed   : > { %760 = vmatmul.mubr.bf16.gmra.mrb[8].mxu0 %v1685_v46 }
  0xee   : > { %769 = vmatprep.mubr.bf16.mxu0 %v1686_v47 }
  0xf5   : > { %770 = vmatmul.mubr.bf16.gmra.mrb[12].mxu0 %v1688_v50 }
  0xf6   : > { %779 = vmatprep.mubr.bf16.mxu0 %v1689_v51 }
  0xfd   : > { %780 = vmatmul.mubr.bf16.gmra.mrb[16].mxu0 %v1691_v54 }
  0xfe   : > { %789 = vmatprep.mubr.bf16.mxu0 %v1692_v55 }
 0x105   : > { %790 = vmatmul.mubr.bf16.gmra.mrb[20].mxu0 %v1694_v58 }
 0x106   : > { %799 = vmatprep.mubr.bf16.mxu0 %v1695_v59 }
 0x10d   : > { %800 = vmatmul.mubr.bf16.gmra.mrb[24].mxu0 %v1697_v61 }
 0x10e   : > { %809 = vmatprep.mubr.bf16.mxu0 %v1698_v62 }
 0x115   : > { %810 = vmatmul.mubr.bf16.gmra.mrb[28].mxu0 %v1700_v63 }
 0x172   : > { %v854_v0 = vpop.f32.mrb[0].mxu1 }
 0x173   : > { %v1491_v1 = vpack.c.bf16 %v854_v0, %v854_v0  ;;  %v856_v2 = vpop.f32.mrb[1].mxu1 }
 0x174   : > { %v857_v3 = vpop.f32.mrb[2].mxu1 }
 0x175   : > { %1225 = vst [vmem:[%s2085_s19 + $0x8] sm:$0xf] %v1491_v1  ;;  %v1493_v4 = vpack.c.bf16 %v857_v3, %v857_v3  ;;  %v859_v5 = vpop.f32.mrb[3].mxu1 }
 0x177   : > { %1227 = vst [vmem:[%s2085_s19 + $0x14] sm:$0xf] %v1493_v4 }
 0x17a   : > { %v862_v6 = vpop.f32.mrb[4].mxu1 }
 0x17b   : > { %v1495_v7 = vpack.c.bf16 %v862_v6, %v862_v6  ;;  %v864_v8 = vpop.f32.mrb[5].mxu1 }
 0x17c   : > { %v865_v9 = vpop.f32.mrb[6].mxu1 }
 0x17d   : > { %1229 = vst [vmem:[%s2085_s19 + $0x20] sm:$0xf] %v1495_v7  ;;  %v1497_v10 = vpack.c.bf16 %v865_v9, %v865_v9  ;;  %v867_v11 = vpop.f32.mrb[7].mxu1 }
 0x17f   : > { %1231 = vst [vmem:[%s2085_s19 + $0x2c] sm:$0xf] %v1497_v10 }
 0x182   : > { %v870_v12 = vpop.f32.mrb[8].mxu1 }
 0x183   : > { %v1499_v13 = vpack.c.bf16 %v870_v12, %v870_v12  ;;  %v872_v14 = vpop.f32.mrb[9].mxu1 }
 0x184   : > { %v873_v15 = vpop.f32.mrb[10].mxu1 }
 0x185   : > { %1233 = vst [vmem:[%s2085_s19 + $0x38] sm:$0xf] %v1499_v13  ;;  %v1501_v16 = vpack.c.bf16 %v873_v15, %v873_v15  ;;  %v875_v17 = vpop.f32.mrb[11].mxu1 }
 0x187   : > { %1235 = vst [vmem:[%s2085_s19 + $0x44] sm:$0xf] %v1501_v16 }
 0x18a   : > { %v878_v18 = vpop.f32.mrb[12].mxu1 }
 0x18b   : > { %v1503_v19 = vpack.c.bf16 %v878_v18, %v878_v18  ;;  %v880_v20 = vpop.f32.mrb[13].mxu1 }
 0x18c   : > { %v881_v21 = vpop.f32.mrb[14].mxu1 }
 0x18d   : > { %1237 = vst [vmem:[%s2085_s19 + $0x50] sm:$0xf] %v1503_v19  ;;  %v1505_v22 = vpack.c.bf16 %v881_v21, %v881_v21  ;;  %v883_v23 = vpop.f32.mrb[15].mxu1 }
 0x18f   : > { %1239 = vst [vmem:[%s2085_s19 + $0x5c] sm:$0xf] %v1505_v22 }
 0x192   : > { %v886_v24 = vpop.f32.mrb[16].mxu1 }
 0x193   : > { %v1507_v25 = vpack.c.bf16 %v886_v24, %v886_v24  ;;  %v888_v26 = vpop.f32.mrb[17].mxu1 }
 0x194   : > { %v889_v27 = vpop.f32.mrb[18].mxu1 }
 0x195   : > { %1241 = vst [vmem:[%s2085_s19 + $0x68] sm:$0xf] %v1507_v25  ;;  %v1509_v28 = vpack.c.bf16 %v889_v27, %v889_v27  ;;  %v891_v29 = vpop.f32.mrb[19].mxu1 }
 0x197   : > { %1243 = vst [vmem:[%s2085_s19 + $0x74] sm:$0xf] %v1509_v28 }
 0x19a   : > { %v894_v30 = vpop.f32.mrb[20].mxu1 }
 0x19b   : > { %v1511_v31 = vpack.c.bf16 %v894_v30, %v894_v30  ;;  %v896_v32 = vpop.f32.mrb[21].mxu1 }
 0x19c   : > { %v897_v33 = vpop.f32.mrb[22].mxu1 }
 0x19d   : > { %1245 = vst [vmem:[%s2085_s19 + $0x80] sm:$0xf] %v1511_v31  ;;  %v1513_v34 = vpack.c.bf16 %v897_v33, %v897_v33  ;;  %v899_v35 = vpop.f32.mrb[23].mxu1 }
 0x19f   : > { %1247 = vst [vmem:[%s2085_s19 + $0x8c] sm:$0xf] %v1513_v34 }
 0x1a2   : > { %v902_v36 = vpop.f32.mrb[24].mxu1 }
 0x1a3   : > { %v1515_v37 = vpack.c.bf16 %v902_v36, %v902_v36  ;;  %v904_v38 = vpop.f32.mrb[25].mxu1 }
 0x1a4   : > { %v905_v39 = vpop.f32.mrb[26].mxu1 }
 0x1a5   : > { %1249 = vst [vmem:[%s2085_s19 + $0x98] sm:$0xf] %v1515_v37  ;;  %v1517_v40 = vpack.c.bf16 %v905_v39, %v905_v39  ;;  %v907_v41 = vpop.f32.mrb[27].mxu1 }
 0x1a7   : > { %1251 = vst [vmem:[%s2085_s19 + $0xa4] sm:$0xf] %v1517_v40 }
 0x1aa   : > { %v910_v47 = vpop.f32.mrb[28].mxu1 }
 0x1ab   : > { %v1519_v49 = vpack.c.bf16 %v910_v47, %v910_v47  ;;  %v912_v50 = vpop.f32.mrb[29].mxu1 }
 0x1ac   : > { %v913_v51 = vpop.f32.mrb[30].mxu1 }
 0x1ad   : > { %1253 = vst [vmem:[%s2085_s19 + $0xb0] sm:$0xf] %v1519_v49  ;;  %v1521_v52 = vpack.c.bf16 %v913_v51, %v913_v51  ;;  %v915_v53 = vpop.f32.mrb[31].mxu1 }
 0x1af   : > { %1255 = vst [vmem:[%s2085_s19 + $0xbc] sm:$0xf] %v1521_v52 }
 0x1b0   : > { %v741_v42 = vpop.f32.mrb[0].mxu0 }
 0x1b1   : > { %v743_v43 = vpop.f32.mrb[1].mxu0 }
 0x1b2   : > { %v1490_v44 = vpack.c.bf16 %v743_v43, %v741_v42  ;;  %v745_v45 = vpop.f32.mrb[2].mxu0 }
 0x1b3   : > { %v747_v46 = vpop.f32.mrb[3].mxu0 }
 0x1b4   : > { %1224 = vst [vmem:[%s2085_s19] sm:$0xff] %v1490_v44  ;;  %v1492_v48 = vpack.c.bf16 %v747_v46, %v745_v45 }
 0x1b6   : > { %1226 = vst [vmem:[%s2085_s19 + $0xc] sm:$0xff] %v1492_v48 }
 0x1b8   : > { %v751_v54 = vpop.f32.mrb[4].mxu0 }
 0x1b9   : > { %v753_v55 = vpop.f32.mrb[5].mxu0 }
 0x1ba   : > { %v1494_v56 = vpack.c.bf16 %v753_v55, %v751_v54  ;;  %v755_v57 = vpop.f32.mrb[6].mxu0 }
 0x1bb   : > { %v757_v58 = vpop.f32.mrb[7].mxu0 }
 0x1bc   : > { %1228 = vst [vmem:[%s2085_s19 + $0x18] sm:$0xff] %v1494_v56  ;;  %v1496_v59 = vpack.c.bf16 %v757_v58, %v755_v57 }
 0x1be   : > { %1230 = vst [vmem:[%s2085_s19 + $0x24] sm:$0xff] %v1496_v59 }
 0x1c0   : > { %v761_v60 = vpop.f32.mrb[8].mxu0 }
 0x1c1   : > { %v763_v61 = vpop.f32.mrb[9].mxu0 }
 0x1c2   : > { %v1498_v62 = vpack.c.bf16 %v763_v61, %v761_v60  ;;  %v765_v63 = vpop.f32.mrb[10].mxu0 }
 0x1c3   : > { %v767_v0 = vpop.f32.mrb[11].mxu0 }
 0x1c4   : > { %1232 = vst [vmem:[%s2085_s19 + $0x30] sm:$0xff] %v1498_v62  ;;  %v1500_v1 = vpack.c.bf16 %v767_v0, %v765_v63 }
 0x1c6   : > { %1234 = vst [vmem:[%s2085_s19 + $0x3c] sm:$0xff] %v1500_v1 }
 0x1c8   : > { %v771_v2 = vpop.f32.mrb[12].mxu0 }
 0x1c9   : > { %v773_v3 = vpop.f32.mrb[13].mxu0 }
 0x1ca   : > { %v1502_v4 = vpack.c.bf16 %v773_v3, %v771_v2  ;;  %v775_v5 = vpop.f32.mrb[14].mxu0 }
 0x1cb   : > { %v777_v6 = vpop.f32.mrb[15].mxu0 }
 0x1cc   : > { %1236 = vst [vmem:[%s2085_s19 + $0x48] sm:$0xff] %v1502_v4  ;;  %v1504_v7 = vpack.c.bf16 %v777_v6, %v775_v5 }
 0x1ce   : > { %1238 = vst [vmem:[%s2085_s19 + $0x54] sm:$0xff] %v1504_v7 }
 0x1d0   : > { %v781_v8 = vpop.f32.mrb[16].mxu0 }
 0x1d1   : > { %v783_v9 = vpop.f32.mrb[17].mxu0 }
 0x1d2   : > { %v1506_v10 = vpack.c.bf16 %v783_v9, %v781_v8  ;;  %v785_v11 = vpop.f32.mrb[18].mxu0 }
 0x1d3   : > { %v787_v12 = vpop.f32.mrb[19].mxu0 }
 0x1d4   : > { %1240 = vst [vmem:[%s2085_s19 + $0x60] sm:$0xff] %v1506_v10  ;;  %v1508_v13 = vpack.c.bf16 %v787_v12, %v785_v11 }
 0x1d6   : > { %1242 = vst [vmem:[%s2085_s19 + $0x6c] sm:$0xff] %v1508_v13 }
 0x1d8   : > { %v791_v14 = vpop.f32.mrb[20].mxu0 }
 0x1d9   : > { %v793_v15 = vpop.f32.mrb[21].mxu0 }
 0x1da   : > { %v1510_v16 = vpack.c.bf16 %v793_v15, %v791_v14  ;;  %v795_v17 = vpop.f32.mrb[22].mxu0 }
 0x1db   : > { %v797_v18 = vpop.f32.mrb[23].mxu0 }
 0x1dc   : > { %1244 = vst [vmem:[%s2085_s19 + $0x78] sm:$0xff] %v1510_v16  ;;  %v1512_v19 = vpack.c.bf16 %v797_v18, %v795_v17 }
 0x1de   : > { %1246 = vst [vmem:[%s2085_s19 + $0x84] sm:$0xff] %v1512_v19 }
 0x1e0   : > { %v801_v20 = vpop.f32.mrb[24].mxu0 }
 0x1e1   : > { %v803_v21 = vpop.f32.mrb[25].mxu0 }
 0x1e2   : > { %v1514_v22 = vpack.c.bf16 %v803_v21, %v801_v20  ;;  %v805_v23 = vpop.f32.mrb[26].mxu0 }
 0x1e3   : > { %v807_v24 = vpop.f32.mrb[27].mxu0 }
 0x1e4   : > { %1248 = vst [vmem:[%s2085_s19 + $0x90] sm:$0xff] %v1514_v22  ;;  %v1516_v25 = vpack.c.bf16 %v807_v24, %v805_v23 }
 0x1e6   : > { %1250 = vst [vmem:[%s2085_s19 + $0x9c] sm:$0xff] %v1516_v25 }
 0x1e8   : > { %v811_v26 = vpop.f32.mrb[28].mxu0 }
 0x1e9   : > { %v813_v27 = vpop.f32.mrb[29].mxu0 }
 0x1ea   : > { %v1518_v28 = vpack.c.bf16 %v813_v27, %v811_v26  ;;  %v815_v29 = vpop.f32.mrb[30].mxu0 }
 0x1eb   : > { %v817_v30 = vpop.f32.mrb[31].mxu0 }
 0x1ec   : > { %1252 = vst [vmem:[%s2085_s19 + $0xa8] sm:$0xff] %v1518_v28  ;;  %v1520_v31 = vpack.c.bf16 %v817_v30, %v815_v29 }
 0x1ee   : > { %1254 = vst [vmem:[%s2085_s19 + $0xb4] sm:$0xff] %v1520_v31 }
 0x1ef   : > { %1772 = shalt.err (!%p1769_p5)
}
 0x1f0   : > { %s1773_s4 = scalar_lea.hbm %s2122_s5, 3072  ;;  %s1777_s3 = scalar_lea.hbm %s2177_s2, 6144 }
 0x1f1   : > { %p1774_p9 = scmp.ne.s32.totalorder %s2122_s5, %s1773_s4  ;;  %p1778_p3 = scmp.lt.u32.totalorder %s2122_s5, %s2177_s2 }
 0x1f2   : > { %p1779_p7 = scmp.lt.u32.totalorder %s1777_s3, %s1773_s4  ;;  %p1781_p4 = scmp.lt.u32.totalorder %s1773_s4, %s2122_s5 }
 0x1f3   : > { %p1775_p1 = pnand %p1774_p9, %p1965_p10 }
 0x1f4   : > { %p1780_p11 = por %p1779_p7, %p1778_p3 }
 0x1f5   : > { %p1776_p2 = pneg %p1775_p1 }
 0x1f6   : > { %p1782_p6 = por %p1781_p4, %p1780_p11 }
 0x1f8   : > { %p1783_p8 = pnand %p1782_p6, %p1776_p2 }
 0x1fa   : > { %1786 = shalt.err (!%p1783_p8)
}
 0x1fb   : > { %s1852_s17 = smov 192   ;;  %s1853_s19 = smov 384  }
 0x1fc   : > { %s1854_s21 = smov 12  }
 0x1fd   : > { %1533 = dma.vmem_to_hbm [thread:$0]  (%p1965_p10), %s2124_s6, 3072, %s2122_s5, %s1257_s12, %s1852_s17, %s1853_s19, %s1854_s21  }
 0x1fe PF: > { %s1288_s7 = sand.u32 1, %s1825_s9   ;;  %p2194_p12 = scmp.ne.s32.totalorder %s2185_s20, 0 }
 0x1ff   : > { %p2195_p13 = scmp.ge.s32.totalorder %s1845_s14, 2  ;;  %s1289_s30 = scalar_lea.sflag [#allocation5], %s1288_s7 }
 0x201   : > { %p1544_p0 = pnand %p2195_p13, %p2194_p12 }
 0x203   : > { %1820 = dma.done.wait (!%p1544_p0), %s1289_s30, 3072  }
 0x204   : > { %1822 = vsyncadd (!%p1544_p0), %s1289_s30, 4294964224  ;;  %s19_s14 = sadd.s32 1, %s1845_s14   ;;  %s2196_s9 = smov %s1829_s10 }
 0x205   : > { %p16_p5 = scmp.ge.s32.totalorder %s19_s14, 4   ;;  %s2197_s10 = smov %s1833_s11 }
 0x206   : > { %s2198_s11 = smov %s1974_s28  ;;  %s2199_s12 = smov %s1841_s13 }
 0x207   : > { %s2200_s13 = smov %s2202_s25  ;;  %18 = sbr.rel (!%p16_p5) target bundleno = 7 (0x7), region = 87 }
 0x20e   :  { %1294 = vsyncpa [#allocation4], 1 }
 0x20f   :  { %1296 = vsyncpa [#allocation4 + $0x1], 1 }
 0x210   :  { %1297 = vsyncpa [#allocation7], 1 }
 0x211   :  { %1299 = vsyncpa [#allocation7 + $0x1], 1 }
 0x212   :  { %1300 = vsyncpa [#allocation5], 1 }
 0x213   :  { %1302 = vsyncpa [#allocation5 + $0x1], 1 }

</bundles_post_ra>
